<compile_context>
chip_gen: v6e
topology: v6e:2x2x1
jax: 0.10.0
libtpu: 0.0.40
codegen_flags: <defaults>
</compile_context>

<pallas_src>
import functools
import math

import jax
import jax.numpy as jnp
from jax.experimental import pallas as pl
from jax.experimental.pallas import tpu as pltpu


# --------------------------- tiled linear (projections) ----------------------

def _matmul_kernel(x_ref, w_ref, o_ref, acc_ref):
    # x: (tm, tk), w: (tn, tk) torch-Linear layout; contraction over the shared K dim.
    @pl.when(pl.program_id(2) == 0)
    def _():
        acc_ref[...] = jnp.zeros_like(acc_ref)

    acc_ref[...] += jax.lax.dot_general(
        x_ref[...], w_ref[...],
        dimension_numbers=(((1,), (1,)), ((), ())),
        preferred_element_type=jnp.float32,
    )

    @pl.when(pl.program_id(2) == pl.num_programs(2) - 1)
    def _():
        o_ref[...] = acc_ref[...].astype(o_ref.dtype)


def _pick_tile(dim, cap, quantum):
    """Largest tile <= cap that divides dim and is quantum-aligned (falls back to dim)."""
    if dim <= cap:
        return dim
    t = (cap // quantum) * quantum
    while t >= quantum:
        if dim % t == 0:
            return t
        t -= quantum
    return dim


def linear(x, w):
    """x: (M, K); w: (N, K) torch-Linear weight (out_features, in_features)."""
    M, K = x.shape
    N = w.shape[0]
    tm = _pick_tile(M, 256, 8)
    tn = _pick_tile(N, 256, 128)
    tk = _pick_tile(K, 512, 128)
    return pl.pallas_call(
        _matmul_kernel,
        out_shape=jax.ShapeDtypeStruct((M, N), x.dtype),
        grid=(M // tm, N // tn, K // tk),
        in_specs=[
            pl.BlockSpec((tm, tk), lambda i, j, k: (i, k)),
            pl.BlockSpec((tn, tk), lambda i, j, k: (j, k)),
        ],
        out_specs=pl.BlockSpec((tm, tn), lambda i, j, k: (i, j)),
        scratch_shapes=[pltpu.VMEM((tm, tn), jnp.float32)],
        compiler_params=pltpu.CompilerParams(
            dimension_semantics=("parallel", "parallel", "arbitrary"),
        ),
    )(x, w)


# --------------------------------- RoPE kernel --------------------------------

def _rope_kernel(x_ref, cos_ref, sin_ref, o_ref):
    # x: (S, D). rotate_half(x)*sin == concat(x2, x1) * sin_signed (sign folded in table).
    x = x_ref[0, 0].astype(jnp.float32)
    d = x.shape[1]
    rot = jnp.concatenate([x[:, d // 2:], x[:, : d // 2]], axis=-1)
    o_ref[0, 0] = (x * cos_ref[...] + rot * sin_ref[...]).astype(o_ref.dtype)


def apply_rope(x, cos, sin_signed):
    """x: (B, H, S, D); cos / sin_signed: (S, D) float32 (scale may be pre-folded)."""
    B, Hn, S, D = x.shape
    return pl.pallas_call(
        _rope_kernel,
        out_shape=jax.ShapeDtypeStruct(x.shape, x.dtype),
        grid=(B, Hn),
        in_specs=[
            pl.BlockSpec((1, 1, S, D), lambda b, h: (b, h, 0, 0)),
            pl.BlockSpec((S, D), lambda b, h: (0, 0)),
            pl.BlockSpec((S, D), lambda b, h: (0, 0)),
        ],
        out_specs=pl.BlockSpec((1, 1, S, D), lambda b, h: (b, h, 0, 0)),
        compiler_params=pltpu.CompilerParams(
            dimension_semantics=("parallel", "parallel"),
        ),
    )(x, cos, sin_signed)


# ------------------------------- attention kernel -----------------------------

def _attention_kernel(q_ref, k_ref, v_ref, mask_ref, o_ref):
    # One (batch, kv-head) tile per grid step; q_ref holds the whole GQA group so the
    # k/v tile is loaded once per group. q already has RoPE and 1/sqrt(D) applied.
    k = k_ref[0, 0]                                # (S, D), input dtype (bf16-capable)
    v = v_ref[0, 0]                                # (S, D)
    mask = mask_ref[0, 0].astype(jnp.float32)      # (S, S) additive mask
    group = q_ref.shape[1]
    nt = (((1,), (1,)), ((), ()))                  # contract last dims: q @ k^T

    for g in range(group):                         # static, unrolled over the GQA group
        q = q_ref[0, g]                            # (S, D)
        s = jax.lax.dot_general(q, k, nt, preferred_element_type=jnp.float32)
        s = s + mask
        m = jnp.max(s, axis=-1, keepdims=True)
        p = jnp.exp(s - m)
        l = jnp.sum(p, axis=-1, keepdims=True)
        o = jnp.dot(p.astype(v.dtype), v, preferred_element_type=jnp.float32)
        # normalize after PV: O(S*D) multiply instead of O(S*S) divide
        o_ref[0, g] = (o * pl.reciprocal(l, approx=False)).astype(o_ref.dtype)


# -------------------------------- module wrapper ------------------------------

def make_rotary_tables(seq_len, head_dim, rope_theta=10000.0):
    pos = jnp.arange(seq_len, dtype=jnp.float32)
    inv_freq = 1.0 / (
        rope_theta ** (jnp.arange(0, head_dim, 2, dtype=jnp.float32) / head_dim)
    )
    freqs = pos[:, None] * inv_freq[None, :]                       # (S, D/2)
    cos = jnp.cos(jnp.concatenate([freqs, freqs], axis=-1))        # (S, D)
    sin_half = jnp.sin(freqs)
    # rotate_half sign folded into the table: x*cos + rotate_half(x)*sin
    #   == x*cos + concat(x[:,D/2:], x[:,:D/2]) * concat(-sin, sin)
    sin_signed = jnp.concatenate([-sin_half, sin_half], axis=-1)   # (S, D)
    return cos, sin_signed


def accelerated_gemma3n_attention(hidden_states, attention_mask, params, *,
                                  num_heads, num_key_value_heads, head_dim,
                                  rope_theta=10000.0):
    B, S, H = hidden_states.shape
    group = num_heads // num_key_value_heads
    nq = num_heads * head_dim
    nkv = num_key_value_heads * head_dim

    # Fused q/k/v projection: concat weights along N, one tiled matmul.
    w_qkv = jnp.concatenate(
        [params["q_proj"], params["k_proj"], params["v_proj"]], axis=0)   # (nq+2*nkv, H)
    x2d = hidden_states.reshape(B * S, H)
    qkv = linear(x2d, w_qkv)                                              # (B*S, nq+2*nkv)
    q, k, v = jnp.split(qkv, [nq, nq + nkv], axis=-1)

    q = q.reshape(B, S, num_heads, head_dim).transpose(0, 2, 1, 3)            # (B, nH,  S, D)
    k = k.reshape(B, S, num_key_value_heads, head_dim).transpose(0, 2, 1, 3)  # (B, nKV, S, D)
    v = v.reshape(B, S, num_key_value_heads, head_dim).transpose(0, 2, 1, 3)

    # Rotary embedding once per head; 1/sqrt(D) folded into q's tables.
    cos, sin_signed = make_rotary_tables(S, head_dim, rope_theta)
    scale = 1.0 / math.sqrt(head_dim)
    q = apply_rope(q, cos * scale, sin_signed * scale)
    k = apply_rope(k, cos, sin_signed)

    attn = pl.pallas_call(
        _attention_kernel,
        out_shape=jax.ShapeDtypeStruct((B, num_heads, S, head_dim), hidden_states.dtype),
        grid=(B, num_key_value_heads),
        in_specs=[
            pl.BlockSpec((1, group, S, head_dim), lambda b, h: (b, h, 0, 0)),
            pl.BlockSpec((1, 1, S, head_dim), lambda b, h: (b, h, 0, 0)),
            pl.BlockSpec((1, 1, S, head_dim), lambda b, h: (b, h, 0, 0)),
            pl.BlockSpec((1, 1, S, S), lambda b, h: (b, 0, 0, 0)),
        ],
        out_specs=pl.BlockSpec((1, group, S, head_dim), lambda b, h: (b, h, 0, 0)),
        compiler_params=pltpu.CompilerParams(
            dimension_semantics=("parallel", "parallel"),
            vmem_limit_bytes=64 * 1024 * 1024,
        ),
    )(q, k, v, attention_mask)

    # transpose(1,2).contiguous().view(bsz, q_len, -1) then o_proj
    attn = attn.transpose(0, 2, 1, 3).reshape(B * S, nq)
    out = linear(attn, params["o_proj"])
    return out.reshape(B, S, H)


# ------------------------------ pure-JAX reference ----------------------------

def reference_attention(hidden_states, attention_mask, params, *,
                        num_heads, num_key_value_heads, head_dim, rope_theta=10000.0):
    B, S, H = hidden_states.shape
    group = num_heads // num_key_value_heads
    hp = jax.lax.Precision.HIGHEST
    q = jnp.einsum("bsh,nh->bsn", hidden_states, params["q_proj"], precision=hp)
    k = jnp.einsum("bsh,nh->bsn", hidden_states, params["k_proj"], precision=hp)
    v = jnp.einsum("bsh,nh->bsn", hidden_states, params["v_proj"], precision=hp)
    q = q.reshape(B, S, num_heads, head_dim).transpose(0, 2, 1, 3)
    k = k.reshape(B, S, num_key_value_heads, head_dim).transpose(0, 2, 1, 3)
    v = v.reshape(B, S, num_key_value_heads, head_dim).transpose(0, 2, 1, 3)

    pos = jnp.arange(S, dtype=jnp.float32)
    inv_freq = 1.0 / (rope_theta ** (jnp.arange(0, head_dim, 2, dtype=jnp.float32) / head_dim))
    emb = jnp.concatenate([pos[:, None] * inv_freq[None, :]] * 2, axis=-1)
    cos, sin = jnp.cos(emb), jnp.sin(emb)

    def rotate_half(x):
        x1, x2 = x[..., : head_dim // 2], x[..., head_dim // 2:]
        return jnp.concatenate([-x2, x1], axis=-1)

    q = q * cos + rotate_half(q) * sin
    k = k * cos + rotate_half(k) * sin

    k = jnp.repeat(k, group, axis=1)
    v = jnp.repeat(v, group, axis=1)

    scores = jnp.einsum("bhqd,bhkd->bhqk", q, k, precision=hp) / jnp.sqrt(jnp.float32(head_dim))
    scores = scores + attention_mask
    p = jax.nn.softmax(scores, axis=-1)
    out = jnp.einsum("bhqk,bhkd->bhqd", p, v, precision=hp)
    out = out.transpose(0, 2, 1, 3).reshape(B, S, num_heads * head_dim)
    return jnp.einsum("bsn,hn->bsh", out, params["o_proj"], precision=hp)


# ------------------------------------- main ------------------------------------

if __name__ == "__main__":
    B, S, H = 2, 8, 32
    num_heads, num_kv_heads, head_dim = 4, 2, 8   # GQA: 2 q-heads per kv-head

    key = jax.random.PRNGKey(0)
    k_x, k_q, k_k, k_v, k_o = jax.random.split(key, 5)

    hidden_states = jax.random.normal(k_x, (B, S, H), dtype=jnp.float32)
    params = {
        "q_proj": 0.05 * jax.random.normal(k_q, (num_heads * head_dim, H), jnp.float32),
        "k_proj": 0.05 * jax.random.normal(k_k, (num_kv_heads * head_dim, H), jnp.float32),
        "v_proj": 0.05 * jax.random.normal(k_v, (num_kv_heads * head_dim, H), jnp.float32),
        "o_proj": 0.05 * jax.random.normal(k_o, (H, num_heads * head_dim), jnp.float32),
    }

    # Causal additive attention mask, HF 4D style: (B, 1, S, S).
    causal = jnp.tril(jnp.ones((S, S), dtype=bool))
    attention_mask = jnp.where(causal, 0.0, -1e9).astype(jnp.float32)[None, None]
    attention_mask = jnp.broadcast_to(attention_mask, (B, 1, S, S))

    run = functools.partial(
        accelerated_gemma3n_attention,
        num_heads=num_heads, num_key_value_heads=num_kv_heads, head_dim=head_dim,
    )
    out = jax.jit(lambda x, m: run(x, m, params))(hidden_states, attention_mask)
    out = jax.block_until_ready(out)

    ref = reference_attention(
        hidden_states, attention_mask, params,
        num_heads=num_heads, num_key_value_heads=num_kv_heads, head_dim=head_dim,
    )
    assert out.shape == (B, S, H)
    err = float(jnp.max(jnp.abs(out - ref)))
    assert err < 2e-3, f"max abs err = {err}"
    print("KERNEL_OK")
</pallas_src>

<mosaic_0001>
module attributes {stable_mosaic.version = 11 : i64} {
  func.func @_matmul_kernel(%arg0: i32, %arg1: i32, %arg2: i32, %arg3: memref<16x32xf32, #tpu.memory_space<vmem>>, %arg4: memref<64x32xf32, #tpu.memory_space<vmem>>, %arg5: memref<16x64xf32, #tpu.memory_space<vmem>>, %arg6: memref<16x64xf32, #tpu.memory_space<vmem>>) attributes {dimension_semantics = [#tpu.dimension_semantics<parallel>, #tpu.dimension_semantics<parallel>, #tpu.dimension_semantics<arbitrary>], iteration_bounds = array<i64: 1, 1, 1>, scalar_prefetch = 0 : i64, scratch_operands = 1 : i64, tpu.core_type = #tpu.core_type<tc>, window_params = [{transform_indices = @transform_0, window_bounds = array<i64: 16, 32>}, {transform_indices = @transform_1, window_bounds = array<i64: 64, 32>}, {transform_indices = @transform_2, window_bounds = array<i64: 16, 64>}]} {
    %c0_i32 = arith.constant 0 : i32
    %0 = arith.cmpi eq, %arg2, %c0_i32 : i32
    %1 = arith.extui %0 : i1 to i32
    %c0_i32_0 = arith.constant 0 : i32
    %2 = arith.cmpi ne, %1, %c0_i32_0 : i32
    scf.if %2 {
      %cst_10 = arith.constant 0.000000e+00 : f32
      %12 = vector.broadcast %cst_10 : f32 to vector<16x64xf32>
      %c0_11 = arith.constant 0 : index
      %c0_12 = arith.constant 0 : index
      %13 = vector.load %arg6[%c0_11, %c0_12] : memref<16x64xf32, #tpu.memory_space<vmem>>, vector<16x64xf32>
      tpu.vector_store %arg6[%c0_11, %c0_12], %12 {strides = array<i32>} : memref<16x64xf32, #tpu.memory_space<vmem>>, vector<16x64xf32>,
    } else {
    }
    %c0 = arith.constant 0 : index
    %c0_1 = arith.constant 0 : index
    %3 = vector.load %arg6[%c0, %c0_1] : memref<16x64xf32, #tpu.memory_space<vmem>>, vector<16x64xf32>
    %c0_2 = arith.constant 0 : index
    %c0_3 = arith.constant 0 : index
    %4 = vector.load %arg3[%c0_2, %c0_3] : memref<16x32xf32, #tpu.memory_space<vmem>>, vector<16x32xf32>
    %c0_4 = arith.constant 0 : index
    %c0_5 = arith.constant 0 : index
    %5 = vector.load %arg4[%c0_4, %c0_5] : memref<64x32xf32, #tpu.memory_space<vmem>>, vector<64x32xf32>
    %cst = arith.constant dense<0.000000e+00> : vector<16x64xf32>
    %6 = tpu.matmul %4, %5, %cst {dimension_numbers = #tpu.dot_dimension_numbers<[1], [1], [0], [0], [0, 0, 1, 0], [], []>} : vector<16x32xf32>, vector<64x32xf32>, vector<16x64xf32> -> vector<16x64xf32>
    %7 = arith.addf %3, %6 : vector<16x64xf32>
    %c0_6 = arith.constant 0 : index
    %c0_7 = arith.constant 0 : index
    %8 = vector.load %arg6[%c0_6, %c0_7] : memref<16x64xf32, #tpu.memory_space<vmem>>, vector<16x64xf32>
    tpu.vector_store %arg6[%c0_6, %c0_7], %7 {strides = array<i32>} : memref<16x64xf32, #tpu.memory_space<vmem>>, vector<16x64xf32>,
    %c0_i32_8 = arith.constant 0 : i32
    %9 = arith.cmpi eq, %arg2, %c0_i32_8 : i32
    %10 = arith.extui %9 : i1 to i32
    %c0_i32_9 = arith.constant 0 : i32
    %11 = arith.cmpi ne, %10, %c0_i32_9 : i32
    scf.if %11 {
      %c0_10 = arith.constant 0 : index
      %c0_11 = arith.constant 0 : index
      %12 = vector.load %arg6[%c0_10, %c0_11] : memref<16x64xf32, #tpu.memory_space<vmem>>, vector<16x64xf32>
      %c0_12 = arith.constant 0 : index
      %c0_13 = arith.constant 0 : index
      %13 = vector.load %arg5[%c0_12, %c0_13] : memref<16x64xf32, #tpu.memory_space<vmem>>, vector<16x64xf32>
      tpu.vector_store %arg5[%c0_12, %c0_13], %12 {strides = array<i32>} : memref<16x64xf32, #tpu.memory_space<vmem>>, vector<16x64xf32>,
    } else {
    }
    return
  }
  func.func @transform_0(%arg0: i32, %arg1: i32, %arg2: i32) -> (i32, i32) {
    %c0_i32 = arith.constant 0 : i32
    return %arg0, %arg2 : i32, i32
  }
  func.func @transform_1(%arg0: i32, %arg1: i32, %arg2: i32) -> (i32, i32) {
    %c0_i32 = arith.constant 0 : i32
    return %arg1, %arg2 : i32, i32
  }
  func.func @transform_2(%arg0: i32, %arg1: i32, %arg2: i32) -> (i32, i32) {
    %c0_i32 = arith.constant 0 : i32
    return %arg0, %arg1 : i32, i32
  }
}

module attributes {stable_mosaic.version = 11 : i64} {
  func.func @_rope_kernel(%arg0: i32, %arg1: i32, %arg2: memref<1x1x8x8xf32, #tpu.memory_space<vmem>>, %arg3: memref<8x8xf32, #tpu.memory_space<vmem>>, %arg4: memref<8x8xf32, #tpu.memory_space<vmem>>, %arg5: memref<1x1x8x8xf32, #tpu.memory_space<vmem>>) attributes {dimension_semantics = [#tpu.dimension_semantics<parallel>, #tpu.dimension_semantics<parallel>], iteration_bounds = array<i64: 2, 4>, scalar_prefetch = 0 : i64, scratch_operands = 0 : i64, tpu.core_type = #tpu.core_type<tc>, window_params = [{transform_indices = @transform_0, window_bounds = array<i64: 1, 1, 8, 8>}, {pipeline_mode = #tpu.pipeline_mode<synchronous>, transform_indices = @transform_1, window_bounds = array<i64: 8, 8>}, {pipeline_mode = #tpu.pipeline_mode<synchronous>, transform_indices = @transform_2, window_bounds = array<i64: 8, 8>}, {transform_indices = @transform_3, window_bounds = array<i64: 1, 1, 8, 8>}]} {
    %c0 = arith.constant 0 : index
    %c0_0 = arith.constant 0 : index
    %c0_1 = arith.constant 0 : index
    %c0_2 = arith.constant 0 : index
    %0 = vector.load %arg2[%c0, %c0_0, %c0_1, %c0_2] : memref<1x1x8x8xf32, #tpu.memory_space<vmem>>, vector<1x1x8x8xf32>
    %1 = vector.shape_cast %0 : vector<1x1x8x8xf32> to vector<8x8xf32>
    %2 = vector.extract_strided_slice %1 {offsets = [0, 4], sizes = [8, 4], strides = [1, 1]} : vector<8x8xf32> to vector<8x4xf32>
    %3 = vector.extract_strided_slice %1 {offsets = [0, 0], sizes = [8, 4], strides = [1, 1]} : vector<8x8xf32> to vector<8x4xf32>
    %4 = tpu.concatenate %2, %3 in 1 : vector<8x4xf32>, vector<8x4xf32> -> vector<8x8xf32>
    %c0_3 = arith.constant 0 : index
    %c0_4 = arith.constant 0 : index
    %5 = vector.load %arg3[%c0_3, %c0_4] : memref<8x8xf32, #tpu.memory_space<vmem>>, vector<8x8xf32>
    %6 = arith.mulf %1, %5 : vector<8x8xf32>
    %c0_5 = arith.constant 0 : index
    %c0_6 = arith.constant 0 : index
    %7 = vector.load %arg4[%c0_5, %c0_6] : memref<8x8xf32, #tpu.memory_space<vmem>>, vector<8x8xf32>
    %8 = arith.mulf %4, %7 : vector<8x8xf32>
    %9 = arith.addf %6, %8 : vector<8x8xf32>
    %c0_7 = arith.constant 0 : index
    %c0_8 = arith.constant 0 : index
    %c0_9 = arith.constant 0 : index
    %c0_10 = arith.constant 0 : index
    %10 = vector.load %arg5[%c0_7, %c0_8, %c0_9, %c0_10] : memref<1x1x8x8xf32, #tpu.memory_space<vmem>>, vector<1x1x8x8xf32>
    %11 = vector.shape_cast %10 : vector<1x1x8x8xf32> to vector<8x8xf32>
    %12 = vector.shape_cast %9 : vector<8x8xf32> to vector<1x1x8x8xf32>
    tpu.vector_store %arg5[%c0_7, %c0_8, %c0_9, %c0_10], %12 {strides = array<i32>} : memref<1x1x8x8xf32, #tpu.memory_space<vmem>>, vector<1x1x8x8xf32>,
    return
  }
  func.func @transform_0(%arg0: i32, %arg1: i32) -> (i32, i32, i32, i32) {
    %c0_i32 = arith.constant 0 : i32
    %c0_i32_0 = arith.constant 0 : i32
    %c0_i32_1 = arith.constant 0 : i32
    return %arg0, %arg1, %c0_i32, %c0_i32_0 : i32, i32, i32, i32
  }
  func.func @transform_1(%arg0: i32, %arg1: i32) -> (i32, i32) {
    %c0_i32 = arith.constant 0 : i32
    %c0_i32_0 = arith.constant 0 : i32
    %c0_i32_1 = arith.constant 0 : i32
    return %c0_i32, %c0_i32_0 : i32, i32
  }
  func.func @transform_2(%arg0: i32, %arg1: i32) -> (i32, i32) {
    %c0_i32 = arith.constant 0 : i32
    %c0_i32_0 = arith.constant 0 : i32
    %c0_i32_1 = arith.constant 0 : i32
    return %c0_i32, %c0_i32_0 : i32, i32
  }
  func.func @transform_3(%arg0: i32, %arg1: i32) -> (i32, i32, i32, i32) {
    %c0_i32 = arith.constant 0 : i32
    %c0_i32_0 = arith.constant 0 : i32
    %c0_i32_1 = arith.constant 0 : i32
    return %arg0, %arg1, %c0_i32, %c0_i32_0 : i32, i32, i32, i32
  }
}

module attributes {stable_mosaic.version = 11 : i64} {
  func.func @_rope_kernel(%arg0: i32, %arg1: i32, %arg2: memref<1x1x8x8xf32, #tpu.memory_space<vmem>>, %arg3: memref<8x8xf32, #tpu.memory_space<vmem>>, %arg4: memref<8x8xf32, #tpu.memory_space<vmem>>, %arg5: memref<1x1x8x8xf32, #tpu.memory_space<vmem>>) attributes {dimension_semantics = [#tpu.dimension_semantics<parallel>, #tpu.dimension_semantics<parallel>], iteration_bounds = array<i64: 2, 2>, scalar_prefetch = 0 : i64, scratch_operands = 0 : i64, tpu.core_type = #tpu.core_type<tc>, window_params = [{transform_indices = @transform_0, window_bounds = array<i64: 1, 1, 8, 8>}, {pipeline_mode = #tpu.pipeline_mode<synchronous>, transform_indices = @transform_1, window_bounds = array<i64: 8, 8>}, {pipeline_mode = #tpu.pipeline_mode<synchronous>, transform_indices = @transform_2, window_bounds = array<i64: 8, 8>}, {transform_indices = @transform_3, window_bounds = array<i64: 1, 1, 8, 8>}]} {
    %c0 = arith.constant 0 : index
    %c0_0 = arith.constant 0 : index
    %c0_1 = arith.constant 0 : index
    %c0_2 = arith.constant 0 : index
    %0 = vector.load %arg2[%c0, %c0_0, %c0_1, %c0_2] : memref<1x1x8x8xf32, #tpu.memory_space<vmem>>, vector<1x1x8x8xf32>
    %1 = vector.shape_cast %0 : vector<1x1x8x8xf32> to vector<8x8xf32>
    %2 = vector.extract_strided_slice %1 {offsets = [0, 4], sizes = [8, 4], strides = [1, 1]} : vector<8x8xf32> to vector<8x4xf32>
    %3 = vector.extract_strided_slice %1 {offsets = [0, 0], sizes = [8, 4], strides = [1, 1]} : vector<8x8xf32> to vector<8x4xf32>
    %4 = tpu.concatenate %2, %3 in 1 : vector<8x4xf32>, vector<8x4xf32> -> vector<8x8xf32>
    %c0_3 = arith.constant 0 : index
    %c0_4 = arith.constant 0 : index
    %5 = vector.load %arg3[%c0_3, %c0_4] : memref<8x8xf32, #tpu.memory_space<vmem>>, vector<8x8xf32>
    %6 = arith.mulf %1, %5 : vector<8x8xf32>
    %c0_5 = arith.constant 0 : index
    %c0_6 = arith.constant 0 : index
    %7 = vector.load %arg4[%c0_5, %c0_6] : memref<8x8xf32, #tpu.memory_space<vmem>>, vector<8x8xf32>
    %8 = arith.mulf %4, %7 : vector<8x8xf32>
    %9 = arith.addf %6, %8 : vector<8x8xf32>
    %c0_7 = arith.constant 0 : index
    %c0_8 = arith.constant 0 : index
    %c0_9 = arith.constant 0 : index
    %c0_10 = arith.constant 0 : index
    %10 = vector.load %arg5[%c0_7, %c0_8, %c0_9, %c0_10] : memref<1x1x8x8xf32, #tpu.memory_space<vmem>>, vector<1x1x8x8xf32>
    %11 = vector.shape_cast %10 : vector<1x1x8x8xf32> to vector<8x8xf32>
    %12 = vector.shape_cast %9 : vector<8x8xf32> to vector<1x1x8x8xf32>
    tpu.vector_store %arg5[%c0_7, %c0_8, %c0_9, %c0_10], %12 {strides = array<i32>} : memref<1x1x8x8xf32, #tpu.memory_space<vmem>>, vector<1x1x8x8xf32>,
    return
  }
  func.func @transform_0(%arg0: i32, %arg1: i32) -> (i32, i32, i32, i32) {
    %c0_i32 = arith.constant 0 : i32
    %c0_i32_0 = arith.constant 0 : i32
    %c0_i32_1 = arith.constant 0 : i32
    return %arg0, %arg1, %c0_i32, %c0_i32_0 : i32, i32, i32, i32
  }
  func.func @transform_1(%arg0: i32, %arg1: i32) -> (i32, i32) {
    %c0_i32 = arith.constant 0 : i32
    %c0_i32_0 = arith.constant 0 : i32
    %c0_i32_1 = arith.constant 0 : i32
    return %c0_i32, %c0_i32_0 : i32, i32
  }
  func.func @transform_2(%arg0: i32, %arg1: i32) -> (i32, i32) {
    %c0_i32 = arith.constant 0 : i32
    %c0_i32_0 = arith.constant 0 : i32
    %c0_i32_1 = arith.constant 0 : i32
    return %c0_i32, %c0_i32_0 : i32, i32
  }
  func.func @transform_3(%arg0: i32, %arg1: i32) -> (i32, i32, i32, i32) {
    %c0_i32 = arith.constant 0 : i32
    %c0_i32_0 = arith.constant 0 : i32
    %c0_i32_1 = arith.constant 0 : i32
    return %arg0, %arg1, %c0_i32, %c0_i32_0 : i32, i32, i32, i32
  }
}

module attributes {stable_mosaic.version = 11 : i64} {
  func.func @_attention_kernel(%arg0: i32, %arg1: i32, %arg2: memref<1x2x8x8xf32, #tpu.memory_space<vmem>>, %arg3: memref<1x1x8x8xf32, #tpu.memory_space<vmem>>, %arg4: memref<1x1x8x8xf32, #tpu.memory_space<vmem>>, %arg5: memref<1x1x8x8xf32, #tpu.memory_space<vmem>>, %arg6: memref<1x2x8x8xf32, #tpu.memory_space<vmem>>) attributes {dimension_semantics = [#tpu.dimension_semantics<parallel>, #tpu.dimension_semantics<parallel>], iteration_bounds = array<i64: 2, 2>, scalar_prefetch = 0 : i64, scratch_operands = 0 : i64, tpu.core_type = #tpu.core_type<tc>, window_params = [{transform_indices = @transform_0, window_bounds = array<i64: 1, 2, 8, 8>}, {transform_indices = @transform_1, window_bounds = array<i64: 1, 1, 8, 8>}, {transform_indices = @transform_2, window_bounds = array<i64: 1, 1, 8, 8>}, {transform_indices = @transform_3, window_bounds = array<i64: 1, 1, 8, 8>}, {transform_indices = @transform_4, window_bounds = array<i64: 1, 2, 8, 8>}]} {
    %c0 = arith.constant 0 : index
    %c0_0 = arith.constant 0 : index
    %c0_1 = arith.constant 0 : index
    %c0_2 = arith.constant 0 : index
    %0 = vector.load %arg3[%c0, %c0_0, %c0_1, %c0_2] : memref<1x1x8x8xf32, #tpu.memory_space<vmem>>, vector<1x1x8x8xf32>
    %1 = vector.shape_cast %0 : vector<1x1x8x8xf32> to vector<8x8xf32>
    %c0_3 = arith.constant 0 : index
    %c0_4 = arith.constant 0 : index
    %c0_5 = arith.constant 0 : index
    %c0_6 = arith.constant 0 : index
    %2 = vector.load %arg4[%c0_3, %c0_4, %c0_5, %c0_6] : memref<1x1x8x8xf32, #tpu.memory_space<vmem>>, vector<1x1x8x8xf32>
    %3 = vector.shape_cast %2 : vector<1x1x8x8xf32> to vector<8x8xf32>
    %c0_7 = arith.constant 0 : index
    %c0_8 = arith.constant 0 : index
    %c0_9 = arith.constant 0 : index
    %c0_10 = arith.constant 0 : index
    %4 = vector.load %arg5[%c0_7, %c0_8, %c0_9, %c0_10] : memref<1x1x8x8xf32, #tpu.memory_space<vmem>>, vector<1x1x8x8xf32>
    %5 = vector.shape_cast %4 : vector<1x1x8x8xf32> to vector<8x8xf32>
    %c0_11 = arith.constant 0 : index
    %c0_12 = arith.constant 0 : index
    %c0_13 = arith.constant 0 : index
    %c0_14 = arith.constant 0 : index
    %6 = vector.load %arg2[%c0_11, %c0_12, %c0_13, %c0_14] : memref<1x2x8x8xf32, #tpu.memory_space<vmem>>, vector<1x1x8x8xf32>
    %7 = vector.shape_cast %6 : vector<1x1x8x8xf32> to vector<8x8xf32>
    %cst = arith.constant dense<0.000000e+00> : vector<8x8xf32>
    %8 = tpu.matmul %7, %1, %cst {dimension_numbers = #tpu.dot_dimension_numbers<[1], [1], [0], [0], [0, 0, 1, 0], [], []>} : vector<8x8xf32>, vector<8x8xf32>, vector<8x8xf32> -> vector<8x8xf32>
    %9 = arith.addf %8, %5 : vector<8x8xf32>
    %cst_15 = arith.constant dense<0xFF800000> : vector<8xf32>
    %10 = vector.multi_reduction <maximumf>, %9, %cst_15 [1] : vector<8x8xf32> to vector<8xf32>
    %11 = vector.shape_cast %10 : vector<8xf32> to vector<8x1xf32>
    %12 = vector.broadcast %11 : vector<8x1xf32> to vector<8x8xf32>
    %13 = arith.subf %9, %12 : vector<8x8xf32>
    %14 = math.exp %13 : vector<8x8xf32>
    %cst_16 = arith.constant dense<0.000000e+00> : vector<8xf32>
    %15 = vector.multi_reduction <add>, %14, %cst_16 [1] : vector<8x8xf32> to vector<8xf32>
    %16 = vector.shape_cast %15 : vector<8xf32> to vector<8x1xf32>
    %cst_17 = arith.constant dense<0.000000e+00> : vector<8x8xf32>
    %17 = tpu.matmul %14, %3, %cst_17 {dimension_numbers = #tpu.dot_dimension_numbers<[1], [0], [0], [1], [0, 0, 1, 1], [], []>} : vector<8x8xf32>, vector<8x8xf32>, vector<8x8xf32> -> vector<8x8xf32>
    %18 = tpu.reciprocal %16 : vector<8x1xf32> -> vector<8x1xf32>
    %19 = vector.broadcast %18 : vector<8x1xf32> to vector<8x8xf32>
    %20 = arith.mulf %17, %19 : vector<8x8xf32>
    %c0_18 = arith.constant 0 : index
    %c0_19 = arith.constant 0 : index
    %c0_20 = arith.constant 0 : index
    %c0_21 = arith.constant 0 : index
    %21 = vector.load %arg6[%c0_18, %c0_19, %c0_20, %c0_21] : memref<1x2x8x8xf32, #tpu.memory_space<vmem>>, vector<1x1x8x8xf32>
    %22 = vector.shape_cast %21 : vector<1x1x8x8xf32> to vector<8x8xf32>
    %23 = vector.shape_cast %20 : vector<8x8xf32> to vector<1x1x8x8xf32>
    tpu.vector_store %arg6[%c0_18, %c0_19, %c0_20, %c0_21], %23 {strides = array<i32>} : memref<1x2x8x8xf32, #tpu.memory_space<vmem>>, vector<1x1x8x8xf32>,
    %c0_22 = arith.constant 0 : index
    %c1 = arith.constant 1 : index
    %c0_23 = arith.constant 0 : index
    %c0_24 = arith.constant 0 : index
    %24 = vector.load %arg2[%c0_22, %c1, %c0_23, %c0_24] : memref<1x2x8x8xf32, #tpu.memory_space<vmem>>, vector<1x1x8x8xf32>
    %25 = vector.shape_cast %24 : vector<1x1x8x8xf32> to vector<8x8xf32>
    %cst_25 = arith.constant dense<0.000000e+00> : vector<8x8xf32>
    %26 = tpu.matmul %25, %1, %cst_25 {dimension_numbers = #tpu.dot_dimension_numbers<[1], [1], [0], [0], [0, 0, 1, 0], [], []>} : vector<8x8xf32>, vector<8x8xf32>, vector<8x8xf32> -> vector<8x8xf32>
    %27 = arith.addf %26, %5 : vector<8x8xf32>
    %cst_26 = arith.constant dense<0xFF800000> : vector<8xf32>
    %28 = vector.multi_reduction <maximumf>, %27, %cst_26 [1] : vector<8x8xf32> to vector<8xf32>
    %29 = vector.shape_cast %28 : vector<8xf32> to vector<8x1xf32>
    %30 = vector.broadcast %29 : vector<8x1xf32> to vector<8x8xf32>
    %31 = arith.subf %27, %30 : vector<8x8xf32>
    %32 = math.exp %31 : vector<8x8xf32>
    %cst_27 = arith.constant dense<0.000000e+00> : vector<8xf32>
    %33 = vector.multi_reduction <add>, %32, %cst_27 [1] : vector<8x8xf32> to vector<8xf32>
    %34 = vector.shape_cast %33 : vector<8xf32> to vector<8x1xf32>
    %cst_28 = arith.constant dense<0.000000e+00> : vector<8x8xf32>
    %35 = tpu.matmul %32, %3, %cst_28 {dimension_numbers = #tpu.dot_dimension_numbers<[1], [0], [0], [1], [0, 0, 1, 1], [], []>} : vector<8x8xf32>, vector<8x8xf32>, vector<8x8xf32> -> vector<8x8xf32>
    %36 = tpu.reciprocal %34 : vector<8x1xf32> -> vector<8x1xf32>
    %37 = vector.broadcast %36 : vector<8x1xf32> to vector<8x8xf32>
    %38 = arith.mulf %35, %37 : vector<8x8xf32>
    %c0_29 = arith.constant 0 : index
    %c1_30 = arith.constant 1 : index
    %c0_31 = arith.constant 0 : index
    %c0_32 = arith.constant 0 : index
    %39 = vector.load %arg6[%c0_29, %c1_30, %c0_31, %c0_32] : memref<1x2x8x8xf32, #tpu.memory_space<vmem>>, vector<1x1x8x8xf32>
    %40 = vector.shape_cast %39 : vector<1x1x8x8xf32> to vector<8x8xf32>
    %41 = vector.shape_cast %38 : vector<8x8xf32> to vector<1x1x8x8xf32>
    tpu.vector_store %arg6[%c0_29, %c1_30, %c0_31, %c0_32], %41 {strides = array<i32>} : memref<1x2x8x8xf32, #tpu.memory_space<vmem>>, vector<1x1x8x8xf32>,
    return
  }
  func.func @transform_0(%arg0: i32, %arg1: i32) -> (i32, i32, i32, i32) {
    %c0_i32 = arith.constant 0 : i32
    %c0_i32_0 = arith.constant 0 : i32
    %c0_i32_1 = arith.constant 0 : i32
    return %arg0, %arg1, %c0_i32, %c0_i32_0 : i32, i32, i32, i32
  }
  func.func @transform_1(%arg0: i32, %arg1: i32) -> (i32, i32, i32, i32) {
    %c0_i32 = arith.constant 0 : i32
    %c0_i32_0 = arith.constant 0 : i32
    %c0_i32_1 = arith.constant 0 : i32
    return %arg0, %arg1, %c0_i32, %c0_i32_0 : i32, i32, i32, i32
  }
  func.func @transform_2(%arg0: i32, %arg1: i32) -> (i32, i32, i32, i32) {
    %c0_i32 = arith.constant 0 : i32
    %c0_i32_0 = arith.constant 0 : i32
    %c0_i32_1 = arith.constant 0 : i32
    return %arg0, %arg1, %c0_i32, %c0_i32_0 : i32, i32, i32, i32
  }
  func.func @transform_3(%arg0: i32, %arg1: i32) -> (i32, i32, i32, i32) {
    %c0_i32 = arith.constant 0 : i32
    %c0_i32_0 = arith.constant 0 : i32
    %c0_i32_1 = arith.constant 0 : i32
    %c0_i32_2 = arith.constant 0 : i32
    return %arg0, %c0_i32, %c0_i32_0, %c0_i32_1 : i32, i32, i32, i32
  }
  func.func @transform_4(%arg0: i32, %arg1: i32) -> (i32, i32, i32, i32) {
    %c0_i32 = arith.constant 0 : i32
    %c0_i32_0 = arith.constant 0 : i32
    %c0_i32_1 = arith.constant 0 : i32
    return %arg0, %arg1, %c0_i32, %c0_i32_0 : i32, i32, i32, i32
  }
}

module attributes {stable_mosaic.version = 11 : i64} {
  func.func @_matmul_kernel(%arg0: i32, %arg1: i32, %arg2: i32, %arg3: memref<16x32xf32, #tpu.memory_space<vmem>>, %arg4: memref<32x32xf32, #tpu.memory_space<vmem>>, %arg5: memref<16x32xf32, #tpu.memory_space<vmem>>, %arg6: memref<16x32xf32, #tpu.memory_space<vmem>>) attributes {dimension_semantics = [#tpu.dimension_semantics<parallel>, #tpu.dimension_semantics<parallel>, #tpu.dimension_semantics<arbitrary>], iteration_bounds = array<i64: 1, 1, 1>, scalar_prefetch = 0 : i64, scratch_operands = 1 : i64, tpu.core_type = #tpu.core_type<tc>, window_params = [{transform_indices = @transform_0, window_bounds = array<i64: 16, 32>}, {transform_indices = @transform_1, window_bounds = array<i64: 32, 32>}, {transform_indices = @transform_2, window_bounds = array<i64: 16, 32>}]} {
    %c0_i32 = arith.constant 0 : i32
    %0 = arith.cmpi eq, %arg2, %c0_i32 : i32
    %1 = arith.extui %0 : i1 to i32
    %c0_i32_0 = arith.constant 0 : i32
    %2 = arith.cmpi ne, %1, %c0_i32_0 : i32
    scf.if %2 {
      %cst_10 = arith.constant 0.000000e+00 : f32
      %12 = vector.broadcast %cst_10 : f32 to vector<16x32xf32>
      %c0_11 = arith.constant 0 : index
      %c0_12 = arith.constant 0 : index
      %13 = vector.load %arg6[%c0_11, %c0_12] : memref<16x32xf32, #tpu.memory_space<vmem>>, vector<16x32xf32>
      tpu.vector_store %arg6[%c0_11, %c0_12], %12 {strides = array<i32>} : memref<16x32xf32, #tpu.memory_space<vmem>>, vector<16x32xf32>,
    } else {
    }
    %c0 = arith.constant 0 : index
    %c0_1 = arith.constant 0 : index
    %3 = vector.load %arg6[%c0, %c0_1] : memref<16x32xf32, #tpu.memory_space<vmem>>, vector<16x32xf32>
    %c0_2 = arith.constant 0 : index
    %c0_3 = arith.constant 0 : index
    %4 = vector.load %arg3[%c0_2, %c0_3] : memref<16x32xf32, #tpu.memory_space<vmem>>, vector<16x32xf32>
    %c0_4 = arith.constant 0 : index
    %c0_5 = arith.constant 0 : index
    %5 = vector.load %arg4[%c0_4, %c0_5] : memref<32x32xf32, #tpu.memory_space<vmem>>, vector<32x32xf32>
    %cst = arith.constant dense<0.000000e+00> : vector<16x32xf32>
    %6 = tpu.matmul %4, %5, %cst {dimension_numbers = #tpu.dot_dimension_numbers<[1], [1], [0], [0], [0, 0, 1, 0], [], []>} : vector<16x32xf32>, vector<32x32xf32>, vector<16x32xf32> -> vector<16x32xf32>
    %7 = arith.addf %3, %6 : vector<16x32xf32>
    %c0_6 = arith.constant 0 : index
    %c0_7 = arith.constant 0 : index
    %8 = vector.load %arg6[%c0_6, %c0_7] : memref<16x32xf32, #tpu.memory_space<vmem>>, vector<16x32xf32>
    tpu.vector_store %arg6[%c0_6, %c0_7], %7 {strides = array<i32>} : memref<16x32xf32, #tpu.memory_space<vmem>>, vector<16x32xf32>,
    %c0_i32_8 = arith.constant 0 : i32
    %9 = arith.cmpi eq, %arg2, %c0_i32_8 : i32
    %10 = arith.extui %9 : i1 to i32
    %c0_i32_9 = arith.constant 0 : i32
    %11 = arith.cmpi ne, %10, %c0_i32_9 : i32
    scf.if %11 {
      %c0_10 = arith.constant 0 : index
      %c0_11 = arith.constant 0 : index
      %12 = vector.load %arg6[%c0_10, %c0_11] : memref<16x32xf32, #tpu.memory_space<vmem>>, vector<16x32xf32>
      %c0_12 = arith.constant 0 : index
      %c0_13 = arith.constant 0 : index
      %13 = vector.load %arg5[%c0_12, %c0_13] : memref<16x32xf32, #tpu.memory_space<vmem>>, vector<16x32xf32>
      tpu.vector_store %arg5[%c0_12, %c0_13], %12 {strides = array<i32>} : memref<16x32xf32, #tpu.memory_space<vmem>>, vector<16x32xf32>,
    } else {
    }
    return
  }
  func.func @transform_0(%arg0: i32, %arg1: i32, %arg2: i32) -> (i32, i32) {
    %c0_i32 = arith.constant 0 : i32
    return %arg0, %arg2 : i32, i32
  }
  func.func @transform_1(%arg0: i32, %arg1: i32, %arg2: i32) -> (i32, i32) {
    %c0_i32 = arith.constant 0 : i32
    return %arg1, %arg2 : i32, i32
  }
  func.func @transform_2(%arg0: i32, %arg1: i32, %arg2: i32) -> (i32, i32) {
    %c0_i32 = arith.constant 0 : i32
    return %arg0, %arg1 : i32, i32
  }
}

</mosaic_0001>

<bundles_post_ra>
// kernel: _lambda_.6
= control target key start
LH: loop header
LB: loop body
LE: loop exit
PB: predicated region body
PF: predicated region fallthrough
CT: control target
= control target key end

     0   :  { %s420_s12 = smov 0   ;;  %s422_s13 = smov 0   ;;  %s477_s0 = inlined_call_operand.vmem [shape: f32[2,4,8,8], index: 0, kind: input, shape index: {}]   ;;  %s478_s1 = inlined_call_operand.vmem [shape: f32[8,8], index: 1, kind: input, shape index: {}]   ;;  %s479_s2 = inlined_call_operand.vmem [shape: f32[8,8], index: 2, kind: input, shape index: {}]   ;;  %s480_s3 = inlined_call_operand.vmem [shape: f32[2,4,8,8], index: 3, kind: output, shape index: {}]  }
   0x1   :  { %s424_s14 = smov 0   ;;  %s426_s15 = smov 0  }
   0x2   :  { %s428_s16 = smov 0  }
   0x3 LB: > { %s22_s17 = sadd.s32 1, %s388_s14  ;;  %s25_s18 = sadd.s32 1, %s392_s15  ;;  %s396_s16 = sphi %s428_s16, %s13_s16   ;;  %s392_s15 = sphi %s426_s15, %s484_s15   ;;  %s388_s14 = sphi %s424_s14, %s483_s14   ;;  %s384_s13 = sphi %s422_s13, %s482_s13   ;;  %s380_s12 = sphi %s420_s12, %s481_s12  }
   0x4   : > { %p23_p0 = scmp.ge.s32.totalorder %s22_s17, 4  ;;  %p309_p1 = scmp.ge.s32.totalorder %s396_s16, 1 }
   0x5   : > { %p156_p2 = scmp.lt.s32.totalorder %s396_s16, 9 }
   0x6   : > { %s486_s17 = smov (%p23_p0, %s22_s17), 0  ;;  %s488_s18 = smov (!%p23_p0, %s25_s18), %s392_s15 }
   0x7   : > { %p157_p3 = pnand %p309_p1, %p156_p2  ;;  %p27_p4 = scmp.ge.s32.totalorder %s488_s18, 2 }
   0x8   : > { %p186_p5 = scmp.lt.s32.totalorder (!%p157_p3), %s384_s13, 1  ;;  %p188_p6 = scmp.lt.s32.totalorder (!%p157_p3), %s380_s12, 3 }
   0x9   : > { %s490_s18 = smov (%p27_p4, %s488_s18), 0  ;;  %160 = sbr.rel (%p157_p3) target bundleno = 145 (0x91), region = 32 }
   0xa   : > { %s398_s25 = smov (!%p157_p3), 124   ;;  %s399_s26 = smov (!%p157_p3), 4  }
   0xe   : > { %s492_s13 = smov (!%p186_p5, %s384_s13), 1  ;;  %s494_s12 = smov (!%p188_p6, %s380_s12), 3  ;;  %v212_v2 = vld [vmem:[%s478_s1] sm:$0xff]  ;;  %vm210_vm0 = vcmask 31744   ;;  %vm217_vm1 = vcmask 64512  }
   0xf   : > { %s310_s19 = sshll.u32 %s492_s13, 2  ;;  %v214_v3 = vld [vmem:[%s479_s2] sm:$0xff] }
  0x10   : > { %s191_s20 = sadd.s32 %s310_s19, %s494_s12 }
  0x11   : > { %s311_s21 = sshll.u32 %s191_s20, 3 }
  0x12   : > { %s193_s24 = scalar_lea.vmem %s477_s0, %s311_s21  ;;  %s201_s6 = scalar_lea.vmem %s480_s3, %s311_s21 }
  0x13   : > { %v202_v0 = vld [vmem:[%s193_s24] sm:$0xff] }
  0x14   : > { %204 = vrot.lane.b32.xlu0 %v202_v0, %s398_s25  ;;  %v213_v4 = vmul.f32 %v212_v2, %v202_v0 }
  0x18   : > { %207 = vrot.lane.b32.xlu0 %v202_v0, %s399_s26 }
  0x86   : > { %v205_v1 = vpop.permute.xlu0 %204 }
  0x8a   : > { %v208_v5 = vpop.permute.xlu0 %207 }
  0x8b   : > { %v211_v6 = vsel %vm210_vm0, %v205_v1, %v208_v5 }
  0x8c   : > { %v215_v7 = vmul.f32 %v214_v3, %v211_v6 }
  0x8e   : > { %v216_v8 = vadd.f32 %v215_v7, %v213_v4 }
  0x90   : > { %218 = vst.msk [vmem:[%s201_s6] sm:$0xff] %vm217_vm1, %v216_v8 }
  0x91 PF: > { %s13_s16 = sadd.s32 1, %s396_s16   ;;  %s481_s12 = smov %s388_s14 }
  0x92   : > { %p10_p7 = scmp.ge.s32.totalorder %s13_s16, 10   ;;  %s482_s13 = smov %s392_s15 }
  0x93   : > { %s483_s14 = smov %s486_s17  ;;  %s484_s15 = smov %s490_s18 }
  0x94   :  { %12 = sbr.rel (!%p10_p7) target bundleno = 3 (0x3), region = 62 }

// kernel: _lambda_.5
= control target key start
LH: loop header
LB: loop body
LE: loop exit
PB: predicated region body
PF: predicated region fallthrough
CT: control target
= control target key end

     0   :  { %7 = vsyncpa [#allocation4], 0  ;;  %s326_s0 = inlined_call_operand.hbm [shape: f32[16,32], index: 0, kind: input, shape index: {}]   ;;  %s327_s1 = inlined_call_operand.hbm [shape: f32[64,32], index: 1, kind: input, shape index: {}]   ;;  %s328_s2 = inlined_call_operand.vmem [shape: f32[16,64], index: 2, kind: output, shape index: {}]  }
   0x1   :  { %8 = vsyncpa [#allocation6], 0  ;;  %s270_s9 = smov [#allocation3]  }
   0x2   :  { %s14_s10 = sshll.u32 %s270_s9, 4  ;;  %s15_s10 = int_to_ptr.vmem [resolvable:$true] %s14_s10 }
   0x3   :  { %s234_s11 = scalar_lea.vmem %s15_s10, 256  ;;  %p239_p1 = scmp.lt.s32.totalorder %s15_s10, %s15_s10 }
   0x4   :  { %p235_p0 = scmp.ne.s32.totalorder %s15_s10, %s234_s11  ;;  %p240_p2 = scmp.lt.s32.totalorder %s234_s11, %s234_s11 }
   0x6   :  { %p241_p3 = por %p240_p2, %p239_p1 }
   0x8   :  { %p242_p4 = pnand %p241_p3, %p235_p0 }
   0xa   :  { %245 = shalt.err (!%p242_p4)
}
   0xb   :  { %s271_s12 = smov 128   ;;  %s272_s13 = smov 8  }
   0xc   :  { %20 = dma.hbm_to_vmem [thread:$0]  %s326_s0, 256, %s15_s10, [#allocation4], %s271_s12, %s271_s12, %s272_s13  }
   0xd   :  { %s273_s16 = smov [#allocation5]  }
   0xe   :  { %s26_s17 = sshll.u32 %s273_s16, 4  ;;  %s27_s17 = int_to_ptr.vmem [resolvable:$true] %s26_s17 }
   0xf   :  { %s254_s18 = scalar_lea.vmem %s27_s17, 1024  ;;  %p259_p6 = scmp.lt.s32.totalorder %s27_s17, %s27_s17 }
  0x10   :  { %p255_p5 = scmp.ne.s32.totalorder %s27_s17, %s254_s18  ;;  %p260_p7 = scmp.lt.s32.totalorder %s254_s18, %s254_s18 }
  0x12   :  { %p261_p8 = por %p260_p7, %p259_p6 }
  0x14   :  { %p262_p9 = pnand %p261_p8, %p255_p5 }
  0x16   :  { %265 = shalt.err (!%p262_p9)
}
  0x17   :  { %32 = dma.hbm_to_vmem [thread:$0]  %s327_s1, 1024, %s27_s17, [#allocation6], %s271_s12, %s271_s12, %s272_s13  }
  0x18   :  { %266 = dma.done.wait [#allocation4], 256  }
  0x19   :  { %267 = vsyncadd [#allocation4], 4294967040 }
  0x1a   :  { %268 = dma.done.wait [#allocation6], 1024  }
  0x1b   :  { %269 = vsyncadd [#allocation6], 4294966272  ;;  %vm43_vm0 = vcmask 523264   ;;  %v274_v0 = vmov 0.0   ;;  %vm58_vm1 = vcmask 261120   ;;  %v57_v1 = vld [vmem:[#allocation5 + $0x38] sm:$0xff] }
  0x1c   :  { %45 = vst.msk [vmem:[#allocation2 + $0x8] sm:$0xff] %vm43_vm0, %v274_v0  ;;  %44 = vst.msk [vmem:[#allocation2] sm:$0xff] %vm43_vm0, %v274_v0  ;;  %v56_v2 = vld [vmem:[#allocation5 + $0x30] sm:$0xff]  ;;  %202 = vmatprep.subr.msk.mxu0 %vm58_vm1, %v57_v1  ;;  %v55_v4 = vld [vmem:[#allocation5 + $0x28] sm:$0xff] }
  0x1d   :  { %203 = vmatpush3.xpose.msk.msra.mxu0 %vm58_vm1, %v57_v1  ;;  %v48_v3 = vld [vmem:[#allocation3] sm:$0xff]  ;;  %v54_v5 = vld [vmem:[#allocation5 + $0x20] sm:$0xff]  ;;  %v53_v6 = vld [vmem:[#allocation5 + $0x18] sm:$0xff] }
  0x1e   :  { %204 = vmatprep.subr.msk.mxu0 %vm58_vm1, %v56_v2  ;;  %218 = vmatprep.mubr.msk.f32.mxu0 %vm58_vm1, %v48_v3  ;;  %v52_v7 = vld [vmem:[#allocation5 + $0x10] sm:$0xff]  ;;  %v51_v8 = vld [vmem:[#allocation5 + $0x8] sm:$0xff]  ;;  %v50_v9 = vld [vmem:[#allocation5] sm:$0xff] }
  0x1f   :  { %v49_v10 = vld [vmem:[#allocation3 + $0x8] sm:$0xff] }
  0x21   :  { %205 = vmatpush3.xpose.msk.msra.mxu0 %vm58_vm1, %v56_v2 }
  0x22   :  { %206 = vmatprep.subr.msk.mxu0 %vm58_vm1, %v55_v4 }
  0x23   :  { %v47_v11 = vld [vmem:[#allocation2 + $0x8] sm:$0xff]  ;;  %v46_v13 = vld [vmem:[#allocation2] sm:$0xff] }
  0x25   :  { %207 = vmatpush3.xpose.msk.msra.mxu0 %vm58_vm1, %v55_v4 }
  0x26   :  { %208 = vmatprep.subr.msk.mxu0 %vm58_vm1, %v54_v5 }
  0x29   :  { %209 = vmatpush3.xpose.msk.msra.mxu0 %vm58_vm1, %v54_v5 }
  0x2a   :  { %210 = vmatprep.subr.msk.mxu0 %vm58_vm1, %v53_v6 }
  0x2d   :  { %211 = vmatpush3.xpose.msk.msra.mxu0 %vm58_vm1, %v53_v6 }
  0x2e   :  { %212 = vmatprep.subr.msk.mxu0 %vm58_vm1, %v52_v7 }
  0x31   :  { %213 = vmatpush3.xpose.msk.msra.mxu0 %vm58_vm1, %v52_v7 }
  0x32   :  { %214 = vmatprep.subr.msk.mxu0 %vm58_vm1, %v51_v8 }
  0x35   :  { %215 = vmatpush3.xpose.msk.msra.mxu0 %vm58_vm1, %v51_v8 }
  0x36   :  { %216 = vmatprep.subr.msk.mxu0 %vm58_vm1, %v50_v9 }
  0x39   :  { %217 = vmatpush3.xpose.msk.msra.mxu0 %vm58_vm1, %v50_v9 }
  0x3c   :  { %219 = vmatmul.mubr.msk.f32.vlgmr.msra.gmra.mxu0 %vm58_vm1, %v49_v10 }
  0xfc   :  { %v220_v12 = vpop.f32.mrf.mxu0 }
  0xfd   :  { %v165_v14 = vadd.f32 %v220_v12, %v47_v11 }
  0xfe   :  { %v155_v15 = vpop.f32.mrf.mxu0 }
  0xff   :  { %168 = vst.msk [vmem:[#allocation2 + $0x8] sm:$0xff] %vm43_vm0, %v165_v14  ;;  %v164_v16 = vadd.f32 %v155_v15, %v46_v13 }
 0x101   :  { %167 = vst.msk [vmem:[#allocation2] sm:$0xff] %vm43_vm0, %v164_v16 }
 0x106   :  { %v173_v17 = vld [vmem:[#allocation2 + $0x8] sm:$0xff] }
 0x107   :  { %175 = vst.msk [vmem:[%s328_s2 + $0x8] sm:$0xff] %vm43_vm0, %v173_v17 }
 0x108   :  { %v172_v18 = vld [vmem:[#allocation2] sm:$0xff] }
 0x109   :  { %174 = vst.msk [vmem:[%s328_s2] sm:$0xff] %vm43_vm0, %v172_v18 }
 0x10a   :  { %180 = vsyncpa [#allocation4], 1 }
 0x10b   :  { %181 = vsyncpa [#allocation6], 1 }

// kernel: _lambda_.7
= control target key start
LH: loop header
LB: loop body
LE: loop exit
PB: predicated region body
PF: predicated region fallthrough
CT: control target
= control target key end

     0   :  { %s420_s12 = smov 0   ;;  %s422_s13 = smov 0   ;;  %s477_s0 = inlined_call_operand.vmem [shape: f32[2,2,8,8], index: 0, kind: input, shape index: {}]   ;;  %s478_s1 = inlined_call_operand.vmem [shape: f32[8,8], index: 1, kind: input, shape index: {}]   ;;  %s479_s2 = inlined_call_operand.vmem [shape: f32[8,8], index: 2, kind: input, shape index: {}]   ;;  %s480_s3 = inlined_call_operand.vmem [shape: f32[2,2,8,8], index: 3, kind: output, shape index: {}]  }
   0x1   :  { %s424_s14 = smov 0   ;;  %s426_s15 = smov 0  }
   0x2   :  { %s428_s16 = smov 0  }
   0x3 LB: > { %s22_s17 = sadd.s32 1, %s388_s14  ;;  %s25_s18 = sadd.s32 1, %s392_s15  ;;  %s396_s16 = sphi %s428_s16, %s13_s16   ;;  %s392_s15 = sphi %s426_s15, %s484_s15   ;;  %s388_s14 = sphi %s424_s14, %s483_s14   ;;  %s384_s13 = sphi %s422_s13, %s482_s13   ;;  %s380_s12 = sphi %s420_s12, %s481_s12  }
   0x4   : > { %p23_p0 = scmp.ge.s32.totalorder %s22_s17, 2  ;;  %p309_p1 = scmp.ge.s32.totalorder %s396_s16, 1 }
   0x5   : > { %p156_p2 = scmp.lt.s32.totalorder %s396_s16, 5 }
   0x6   : > { %s486_s17 = smov (%p23_p0, %s22_s17), 0  ;;  %s488_s18 = smov (!%p23_p0, %s25_s18), %s392_s15 }
   0x7   : > { %p157_p3 = pnand %p309_p1, %p156_p2  ;;  %p27_p4 = scmp.ge.s32.totalorder %s488_s18, 2 }
   0x8   : > { %p186_p5 = scmp.lt.s32.totalorder (!%p157_p3), %s384_s13, 1  ;;  %p188_p6 = scmp.lt.s32.totalorder (!%p157_p3), %s380_s12, 1 }
   0x9   : > { %s490_s18 = smov (%p27_p4, %s488_s18), 0  ;;  %160 = sbr.rel (%p157_p3) target bundleno = 145 (0x91), region = 32 }
   0xa   : > { %s398_s25 = smov (!%p157_p3), 124   ;;  %s399_s26 = smov (!%p157_p3), 4  }
   0xe   : > { %s492_s13 = smov (!%p186_p5, %s384_s13), 1  ;;  %s494_s12 = smov (!%p188_p6, %s380_s12), 1  ;;  %v212_v2 = vld [vmem:[%s478_s1] sm:$0xff]  ;;  %vm210_vm0 = vcmask 31744   ;;  %vm217_vm1 = vcmask 64512  }
   0xf   : > { %s310_s19 = sshll.u32 %s492_s13, 1  ;;  %v214_v3 = vld [vmem:[%s479_s2] sm:$0xff] }
  0x10   : > { %s191_s20 = sadd.s32 %s310_s19, %s494_s12 }
  0x11   : > { %s311_s21 = sshll.u32 %s191_s20, 3 }
  0x12   : > { %s193_s24 = scalar_lea.vmem %s477_s0, %s311_s21  ;;  %s201_s6 = scalar_lea.vmem %s480_s3, %s311_s21 }
  0x13   : > { %v202_v0 = vld [vmem:[%s193_s24] sm:$0xff] }
  0x14   : > { %204 = vrot.lane.b32.xlu0 %v202_v0, %s398_s25  ;;  %v213_v4 = vmul.f32 %v212_v2, %v202_v0 }
  0x18   : > { %207 = vrot.lane.b32.xlu0 %v202_v0, %s399_s26 }
  0x86   : > { %v205_v1 = vpop.permute.xlu0 %204 }
  0x8a   : > { %v208_v5 = vpop.permute.xlu0 %207 }
  0x8b   : > { %v211_v6 = vsel %vm210_vm0, %v205_v1, %v208_v5 }
  0x8c   : > { %v215_v7 = vmul.f32 %v214_v3, %v211_v6 }
  0x8e   : > { %v216_v8 = vadd.f32 %v215_v7, %v213_v4 }
  0x90   : > { %218 = vst.msk [vmem:[%s201_s6] sm:$0xff] %vm217_vm1, %v216_v8 }
  0x91 PF: > { %s13_s16 = sadd.s32 1, %s396_s16   ;;  %s481_s12 = smov %s388_s14 }
  0x92   : > { %p10_p7 = scmp.ge.s32.totalorder %s13_s16, 6   ;;  %s482_s13 = smov %s392_s15 }
  0x93   : > { %s483_s14 = smov %s486_s17  ;;  %s484_s15 = smov %s490_s18 }
  0x94   :  { %12 = sbr.rel (!%p10_p7) target bundleno = 3 (0x3), region = 62 }

// kernel: _lambda_.8
= control target key start
LH: loop header
LB: loop body
LE: loop exit
PB: predicated region body
PF: predicated region fallthrough
CT: control target
= control target key end

     0   :  { %s952_s15 = smov 0   ;;  %s954_s16 = smov 0   ;;  %s1040_s0 = inlined_call_operand.vmem [shape: f32[2,4,8,8], index: 0, kind: input, shape index: {}]   ;;  %s1041_s1 = inlined_call_operand.vmem [shape: f32[2,2,8,8], index: 1, kind: input, shape index: {}]   ;;  %s1042_s2 = inlined_call_operand.vmem [shape: f32[2,2,8,8], index: 2, kind: input, shape index: {}]   ;;  %s1043_s3 = inlined_call_operand.vmem [shape: f32[2,1,8,8], index: 3, kind: input, shape index: {}]   ;;  %s1044_s4 = inlined_call_operand.vmem [shape: f32[2,4,8,8], index: 4, kind: output, shape index: {}]  }
   0x1   :  { %s956_s17 = smov 0   ;;  %s958_s18 = smov 0  }
   0x2   :  { %s960_s19 = smov 0  }
   0x3 LB: > { %s23_s20 = sadd.s32 1, %s915_s17  ;;  %s26_s21 = sadd.s32 1, %s919_s18  ;;  %s923_s19 = sphi %s960_s19, %s14_s19   ;;  %s919_s18 = sphi %s958_s18, %s1048_s18   ;;  %s915_s17 = sphi %s956_s17, %s1047_s17   ;;  %s911_s16 = sphi %s954_s16, %s1046_s16   ;;  %s907_s15 = sphi %s952_s15, %s1045_s15  }
   0x4   : > { %p24_p0 = scmp.ge.s32.totalorder %s23_s20, 2  ;;  %p785_p1 = scmp.ge.s32.totalorder %s923_s19, 1 }
   0x5   : > { %p222_p2 = scmp.lt.s32.totalorder %s923_s19, 5 }
   0x6   : > { %s1050_s20 = smov (%p24_p0, %s23_s20), 0  ;;  %s1052_s21 = smov (!%p24_p0, %s26_s21), %s919_s18 }
   0x7   : > { %p223_p3 = pnand %p785_p1, %p222_p2  ;;  %p28_p4 = scmp.ge.s32.totalorder %s1052_s21, 2 }
   0x8   : > { %p277_p5 = scmp.lt.s32.totalorder (!%p223_p3), %s911_s16, 1  ;;  %p288_p6 = scmp.lt.s32.totalorder (!%p223_p3), %s907_s15, 1 }
   0x9   : > { %s1054_s21 = smov (%p28_p4, %s1052_s21), 0  ;;  %226 = sbr.rel (%p223_p3) target bundleno = 927 (0x39f), region = 36 }
   0xa   : > { %s786_s22 = sshll.u32 (!%p223_p3), %s907_s15, 1 }
   0xb   : > { %p279_p7 = scmp.lt.s32.totalorder (!%p223_p3), %s786_s22, 3 }
   0xe   : > { %v925_v0 = vmov 0.0   ;;  %vm926_vm0 = vmmov 0   ;;  %s1056_s16 = smov (!%p277_p5, %s911_s16), 1  ;;  %s1058_s15 = smov (!%p288_p6, %s907_s15), 1  ;;  %vm320_vm1 = vcmask 64512  }
   0xf   : > { %815 = vmatprep.subr.mxu0 %v925_v0  ;;  %817 = vmatprep.mubr.msk.f32.mxu0 %vm926_vm0, %v925_v0  ;;  %s789_s23 = sshll.u32 %s1056_s16, 1  ;;  %s787_s29 = sshll.u32 %s1056_s16, 2 }
  0x10   : > { %820 = vmatprep.subr.mxu1 %v925_v0  ;;  %822 = vmatprep.mubr.msk.f32.mxu1 %vm926_vm0, %v925_v0  ;;  %s291_s24 = sadd.s32 %s789_s23, %s1058_s15  ;;  %s1060_s22 = smov (!%p279_p7, %s786_s22), 3 }
  0x11   : > { %s790_s25 = sshll.u32 %s291_s24, 3  ;;  %s993_s30 = sadd.s32 %s787_s29, %s1060_s22 }
  0x12   : > { %s293_s28 = scalar_lea.vmem %s1041_s1, %s790_s25  ;;  %s788_s5 = sshll.u32 %s993_s30, 3 }
  0x13   : > { %v316_v1 = vld [vmem:[%s293_s28] sm:$0xff]  ;;  %s284_s8 = scalar_lea.vmem %s1040_s0, %s788_s5  ;;  %s793_s9 = sshll.u32 %s1056_s16, 3 }
  0x14   : > { %816 = vmatpush3.xpose.msk.msra.mxu0 %vm320_vm1, %v316_v1  ;;  %v319_v2 = vld [vmem:[%s284_s8] sm:$0xff]  ;;  %s305_s12 = scalar_lea.vmem %s1043_s3, %s793_s9  ;;  %s301_s15 = scalar_lea.vmem %s1042_s2, %s790_s25  ;;  %v800_v14 = vld [vmem:[%s284_s8 + $0x8] sm:$0xff] }
  0x15   : > { %830 = vmatprep.subr.mxu0 %v925_v0  ;;  %v318_v3 = vld [vmem:[%s305_s12] sm:$0xff]  ;;  %s314_s23 = scalar_lea.vmem %s1044_s4, %s788_s5 }
  0x16   : > { %v317_v8 = vld [vmem:[%s301_s15] sm:$0xff] }
  0x17   : > { %818 = vmatmul.mubr.msk.f32.vlgmr.msra.gmra.mxu0 %vm320_vm1, %v319_v2  ;;  %821 = vmatpush3.msra.mxu1 %v317_v8 }
  0x18   : > { %832 = vmatprep.mubr.msk.f32.mxu0 %vm926_vm0, %v925_v0  ;;  %831 = vmatpush3.msra.mxu0 %v317_v8 }
  0x19   : > { %825 = vmatprep.subr.mxu1 %v925_v0 }
  0xd7   : > { %v393_v4 = vpop.f32.mrf.mxu0 }
  0xd8   : > { %v394_v5 = vadd.f32 %v393_v4, %v318_v3 }
  0xd9   : > { %v819_v6 = vpop.f32.mrf.mxu0 }
  0xda   : > { %v397_v7 = vsel %vm320_vm1, %v394_v5, -inf }
  0xdb   : > { %398 = vmax.xlane.f32.xlu0 %v397_v7 }
 0x164   : > { %v399_v9 = vpop.xlane.xlu0 %398 }
 0x165   : > { %v400_v10 = vsub.f32 %v394_v5, %v399_v9 }
 0x167   : > { %v401_v11 = vmul.f32 1.442695, %v400_v10 }
 0x169   : > { %877 = vpow2.f32 %v401_v11 }
 0x176   : > { %v878_v12 = vpop.eup %877 }
 0x177   : > { %823 = vmatmul.mubr.msk.f32.vlgmr.msra.gmra.mxu1 %vm320_vm1, %v878_v12  ;;  %v403_v13 = vsel %vm320_vm1, %v878_v12, 0.0 }
 0x178   : > { %826 = vmatpush3.xpose.msk.msra.mxu1 %vm320_vm1, %v316_v1  ;;  %404 = vadd.xlane.f32.xlu1 %v403_v13 }
 0x179   : > { %827 = vmatprep.mubr.msk.f32.mxu1 %vm926_vm0, %v925_v0 }
 0x17b   : > { %828 = vmatmul.mubr.msk.f32.vlgmr.msra.gmra.mxu1 %vm320_vm1, %v800_v14 }
 0x201   : > { %v405_v15 = vpop.xlane.xlu1 %404 }
 0x202   : > { %879 = vrcp.f32 %v405_v15 }
 0x20f   : > { %v880_v16 = vpop.eup %879 }
 0x237   : > { %v475_v17 = vpop.f32.mrf.mxu1 }
 0x238   : > { %v480_v18 = vmul.f32 %v880_v16, %v475_v17 }
 0x239   : > { %v824_v19 = vpop.f32.mrf.mxu1 }
 0x23a   : > { %481 = vst.msk [vmem:[%s314_s23] sm:$0xff] %vm320_vm1, %v480_v18 }
 0x23b   : > { %v553_v20 = vpop.f32.mrf.mxu1 }
 0x23c   : > { %v554_v21 = vadd.f32 %v553_v20, %v318_v3 }
 0x23d   : > { %v829_v22 = vpop.f32.mrf.mxu1 }
 0x23e   : > { %v557_v23 = vsel %vm320_vm1, %v554_v21, -inf }
 0x23f   : > { %558 = vmax.xlane.f32.xlu0 %v557_v23 }
 0x2c8   : > { %v559_v24 = vpop.xlane.xlu0 %558 }
 0x2c9   : > { %v560_v25 = vsub.f32 %v554_v21, %v559_v24 }
 0x2cb   : > { %v561_v26 = vmul.f32 1.442695, %v560_v25 }
 0x2cd   : > { %881 = vpow2.f32 %v561_v26 }
 0x2da   : > { %v882_v27 = vpop.eup %881 }
 0x2db   : > { %833 = vmatmul.mubr.msk.f32.vlgmr.msra.gmra.mxu0 %vm320_vm1, %v882_v27  ;;  %v563_v28 = vsel %vm320_vm1, %v882_v27, 0.0 }
 0x2dc   : > { %564 = vadd.xlane.f32.xlu1 %v563_v28 }
 0x365   : > { %v565_v29 = vpop.xlane.xlu1 %564 }
 0x366   : > { %883 = vrcp.f32 %v565_v29 }
 0x373   : > { %v884_v30 = vpop.eup %883 }
 0x39b   : > { %v635_v31 = vpop.f32.mrf.mxu0 }
 0x39c   : > { %v640_v32 = vmul.f32 %v884_v30, %v635_v31 }
 0x39d   : > { %v834_v33 = vpop.f32.mrf.mxu0 }
 0x39e   : > { %804 = vst.msk [vmem:[%s314_s23 + $0x8] sm:$0xff] %vm320_vm1, %v640_v32 }
 0x39f PF: > { %s14_s19 = sadd.s32 1, %s923_s19   ;;  %s1045_s15 = smov %s915_s17 }
 0x3a0   : > { %p11_p8 = scmp.ge.s32.totalorder %s14_s19, 6   ;;  %s1046_s16 = smov %s919_s18 }
 0x3a1   : > { %s1047_s17 = smov %s1050_s20  ;;  %s1048_s18 = smov %s1054_s21 }
 0x3a2   :  { %13 = sbr.rel (!%p11_p8) target bundleno = 3 (0x3), region = 77 }

// kernel: _lambda_.9
= control target key start
LH: loop header
LB: loop body
LE: loop exit
PB: predicated region body
PF: predicated region fallthrough
CT: control target
= control target key end

     0   :  { %vm16_vm0 = vcmask 261120   ;;  %v197_v3 = vmov 0.0   ;;  %s253_s0 = inlined_call_operand.vmem [shape: f32[16,32], index: 0, kind: input, shape index: {}]   ;;  %s254_s1 = inlined_call_operand.vmem [shape: f32[32,32], index: 1, kind: input, shape index: {}]   ;;  %s255_s2 = inlined_call_operand.hbm [shape: f32[16,32], index: 2, kind: output, shape index: {}]  }
   0x1   :  { %v26_v0 = vld [vmem:[%s254_s1 + $0x18] sm:$0xff]  ;;  %v25_v1 = vld [vmem:[%s254_s1 + $0x10] sm:$0xff]  ;;  %v21_v2 = vld [vmem:[%s253_s0] sm:$0xff]  ;;  %18 = vst.msk [vmem:[#allocation2 + $0x8] sm:$0xff] %vm16_vm0, %v197_v3 }
   0x2   :  { %160 = vmatprep.subr.msk.mxu0 %vm16_vm0, %v26_v0  ;;  %17 = vst.msk [vmem:[#allocation2] sm:$0xff] %vm16_vm0, %v197_v3  ;;  %168 = vmatprep.mubr.msk.f32.mxu0 %vm16_vm0, %v21_v2 }
   0x3   :  { %161 = vmatpush3.xpose.msk.msra.mxu0 %vm16_vm0, %v26_v0 }
   0x4   :  { %7 = vsyncpa [#allocation4], 0  ;;  %162 = vmatprep.subr.msk.mxu0 %vm16_vm0, %v25_v1  ;;  %v24_v4 = vld [vmem:[%s254_s1 + $0x8] sm:$0xff]  ;;  %v23_v5 = vld [vmem:[%s254_s1] sm:$0xff]  ;;  %s198_s1 = smov [#allocation3]  }
   0x5   :  { %v22_v6 = vld [vmem:[%s253_s0 + $0x8] sm:$0xff]  ;;  %s137_s21 = sshll.u32 %s198_s1, 4  ;;  %s138_s21 = int_to_ptr.vmem [resolvable:$true] %s137_s21 }
   0x6   :  { %s175_s0 = scalar_lea.vmem %s138_s21, 256  ;;  %p180_p1 = scmp.lt.s32.totalorder %s138_s21, %s138_s21 }
   0x7   :  { %163 = vmatpush3.xpose.msk.msra.mxu0 %vm16_vm0, %v25_v1  ;;  %p176_p0 = scmp.ne.s32.totalorder %s138_s21, %s175_s0  ;;  %p181_p2 = scmp.lt.s32.totalorder %s175_s0, %s175_s0 }
   0x8   :  { %164 = vmatprep.subr.msk.mxu0 %vm16_vm0, %v24_v4  ;;  %v20_v7 = vld [vmem:[#allocation2 + $0x8] sm:$0xff] }
   0x9   :  { %v19_v9 = vld [vmem:[#allocation2] sm:$0xff]  ;;  %p182_p3 = por %p181_p2, %p180_p1 }
   0xb   :  { %165 = vmatpush3.xpose.msk.msra.mxu0 %vm16_vm0, %v24_v4  ;;  %p183_p4 = pnand %p182_p3, %p176_p0 }
   0xc   :  { %166 = vmatprep.subr.msk.mxu0 %vm16_vm0, %v23_v5 }
   0xf   :  { %167 = vmatpush3.xpose.msk.msra.mxu0 %vm16_vm0, %v23_v5 }
  0x12   :  { %169 = vmatmul.mubr.msk.f32.vlgmr.msra.gmra.mxu0 %vm16_vm0, %v22_v6 }
  0xd2   :  { %v170_v8 = vpop.f32.mrf.mxu0 }
  0xd3   :  { %v122_v10 = vadd.f32 %v170_v8, %v20_v7 }
  0xd4   :  { %v112_v11 = vpop.f32.mrf.mxu0 }
  0xd5   :  { %124 = vst.msk [vmem:[#allocation2 + $0x8] sm:$0xff] %vm16_vm0, %v122_v10  ;;  %v121_v12 = vadd.f32 %v112_v11, %v19_v9 }
  0xd7   :  { %123 = vst.msk [vmem:[#allocation2] sm:$0xff] %vm16_vm0, %v121_v12 }
  0xdc   :  { %v129_v13 = vld [vmem:[#allocation2 + $0x8] sm:$0xff] }
  0xdd   :  { %131 = vst.msk [vmem:[#allocation3 + $0x8] sm:$0xff] %vm16_vm0, %v129_v13 }
  0xde   :  { %v128_v14 = vld [vmem:[#allocation2] sm:$0xff] }
  0xdf   :  { %130 = vst.msk [vmem:[#allocation3] sm:$0xff] %vm16_vm0, %v128_v14 }
  0xe0   :  { %186 = shalt.err (!%p183_p4)
}
  0xe1   :  { %s199_s22 = smov 128   ;;  %s200_s23 = smov 8  }
  0xe2   :  { %143 = dma.vmem_to_hbm [thread:$0]  %s138_s21, 256, %s255_s2, [#allocation4], %s199_s22, %s199_s22, %s200_s23  }
  0xe3   :  { %195 = dma.done.wait [#allocation4], 256  }
  0xe4   :  { %196 = vsyncadd [#allocation4], 4294967040 }
  0xe5   :  { %147 = vsyncpa [#allocation4], 1 }

</bundles_post_ra>
